<compile_context>
chip_gen: v6e
topology: v6e:2x2x1
jax: 0.10.0
libtpu: 0.0.40
codegen_flags: <defaults>
</compile_context>

<pallas_src>
import jax
import jax.numpy as jnp
from jax import lax
from jax.experimental import pallas as pl
from jax.experimental.pallas import tpu as pltpu


def make_conv_kernel(N, CIN, COUT, H, W, KH, KW):
    OH, OW = H - KH + 1, W - KW + 1

    def kernel(x_ref, w_ref, b_ref, o_ref):
        # x_ref: (N, CIN, H, W)            VMEM
        # w_ref: (COUT*CIN*KH*KW,)         SMEM  (flattened OIHW weights, scalars)
        # b_ref: (COUT,)                   SMEM
        # o_ref: (N, COUT, OH, OW)         VMEM  (NCHW output, no wrapper transpose)
        for n in range(N):
            accs = [jnp.zeros((OH, OW), jnp.float32) for _ in range(COUT)]
            for ci in range(CIN):
                for kh in range(KH):
                    for kw in range(KW):
                        # One static 2-D slice per tap, reused for every output channel.
                        win = x_ref[n, ci, kh:kh + OH, kw:kw + OW]      # (OH, OW)
                        for co in range(COUT):
                            widx = ((co * CIN + ci) * KH + kh) * KW + kw
                            accs[co] = accs[co] + w_ref[widx] * win     # scalar-bcast FMA
            for co in range(COUT):
                o_ref[n, co, :, :] = (accs[co] + b_ref[co]).astype(o_ref.dtype)

    return kernel


def conv2d_pallas(x, w, b):
    """Valid 2-D convolution (stride 1, no padding), NCHW input / OIHW weights."""
    N, CIN, H, W = x.shape
    COUT, CIN2, KH, KW = w.shape
    assert CIN == CIN2
    OH, OW = H - KH + 1, W - KW + 1

    kernel = make_conv_kernel(N, CIN, COUT, H, W, KH, KW)
    return pl.pallas_call(
        kernel,
        out_shape=jax.ShapeDtypeStruct((N, COUT, OH, OW), x.dtype),
        in_specs=[
            pl.BlockSpec(memory_space=pltpu.MemorySpace.VMEM),   # x, whole array
            pl.BlockSpec(memory_space=pltpu.MemorySpace.SMEM),   # weights (flat scalars)
            pl.BlockSpec(memory_space=pltpu.MemorySpace.SMEM),   # bias
        ],
        out_specs=pl.BlockSpec(memory_space=pltpu.MemorySpace.VMEM),
    )(x, w.reshape(COUT * CIN * KH * KW), b)


def model_forward(x, conv_w, conv_b):
    s = conv2d_pallas(x, conv_w, conv_b)
    # BatchNorm2d output `z` is computed then discarded in the torch module; it does
    # not affect the returned tensor, so it is intentionally elided here.
    return s


if __name__ == "__main__":
    # Shapes implied by the module: Conv2d(2, 2, 3) applied to (1, 2, 6, 6).
    N, CIN, H, W = 1, 2, 6, 6
    COUT, KH, KW = 2, 3, 3

    key = jax.random.PRNGKey(0)
    kx, kw, kb = jax.random.split(key, 3)

    x = jax.random.normal(kx, (N, CIN, H, W), dtype=jnp.float32)

    # Deterministic parameter init (PyTorch-style uniform(-1/sqrt(fan_in), +1/sqrt(fan_in))).
    fan_in = CIN * KH * KW
    bound = 1.0 / jnp.sqrt(jnp.float32(fan_in))
    conv_w = jax.random.uniform(kw, (COUT, CIN, KH, KW), jnp.float32, -bound, bound)
    conv_b = jax.random.uniform(kb, (COUT,), jnp.float32, -bound, bound)

    out = model_forward(x, conv_w, conv_b)
    out = jax.block_until_ready(out)

    # Reference (plain XLA) conv for a correctness check.
    ref = lax.conv_general_dilated(
        x, conv_w, window_strides=(1, 1), padding="VALID",
        dimension_numbers=("NCHW", "OIHW", "NCHW"),
    ) + conv_b.reshape(1, COUT, 1, 1)

    assert out.shape == (N, COUT, H - KH + 1, W - KW + 1)
    assert jnp.allclose(out, ref, atol=1e-4, rtol=1e-4), "mismatch vs reference conv"

    print("KERNEL_OK")
</pallas_src>

<mosaic_0001>
module attributes {stable_mosaic.version = 11 : i64} {
  func.func @kernel(%arg0: memref<1x2x6x6xf32, #tpu.memory_space<vmem>>, %arg1: memref<36xf32, #tpu.memory_space<smem>>, %arg2: memref<2xf32, #tpu.memory_space<smem>>, %arg3: memref<1x2x4x4xf32, #tpu.memory_space<vmem>>) attributes {dimension_semantics = [], scalar_prefetch = 0 : i64, scratch_operands = 0 : i64, tpu.core_type = #tpu.core_type<tc>} {
    %cst = arith.constant 0.000000e+00 : f32
    %0 = vector.broadcast %cst : f32 to vector<4x4xf32>
    %cst_0 = arith.constant 0.000000e+00 : f32
    %1 = vector.broadcast %cst_0 : f32 to vector<4x4xf32>
    %c0 = arith.constant 0 : index
    %c0_1 = arith.constant 0 : index
    %c0_2 = arith.constant 0 : index
    %c0_3 = arith.constant 0 : index
    %2 = vector.load %arg0[%c0, %c0_1, %c0_2, %c0_3] : memref<1x2x6x6xf32, #tpu.memory_space<vmem>>, vector<1x1x4x4xf32>
    %3 = vector.shape_cast %2 : vector<1x1x4x4xf32> to vector<4x4xf32>
    %c0_4 = arith.constant 0 : index
    %4 = memref.load %arg1[%c0_4] : memref<36xf32, #tpu.memory_space<smem>>
    %5 = vector.broadcast %4 : f32 to vector<4x4xf32>
    %6 = arith.mulf %5, %3 : vector<4x4xf32>
    %7 = arith.addf %0, %6 : vector<4x4xf32>
    %c18 = arith.constant 18 : index
    %8 = memref.load %arg1[%c18] : memref<36xf32, #tpu.memory_space<smem>>
    %9 = vector.broadcast %8 : f32 to vector<4x4xf32>
    %10 = arith.mulf %9, %3 : vector<4x4xf32>
    %11 = arith.addf %1, %10 : vector<4x4xf32>
    %c0_5 = arith.constant 0 : index
    %c0_6 = arith.constant 0 : index
    %c0_7 = arith.constant 0 : index
    %c1 = arith.constant 1 : index
    %12 = vector.load %arg0[%c0_5, %c0_6, %c0_7, %c1] : memref<1x2x6x6xf32, #tpu.memory_space<vmem>>, vector<1x1x4x4xf32>
    %13 = vector.shape_cast %12 : vector<1x1x4x4xf32> to vector<4x4xf32>
    %c1_8 = arith.constant 1 : index
    %14 = memref.load %arg1[%c1_8] : memref<36xf32, #tpu.memory_space<smem>>
    %15 = vector.broadcast %14 : f32 to vector<4x4xf32>
    %16 = arith.mulf %15, %13 : vector<4x4xf32>
    %17 = arith.addf %7, %16 : vector<4x4xf32>
    %c19 = arith.constant 19 : index
    %18 = memref.load %arg1[%c19] : memref<36xf32, #tpu.memory_space<smem>>
    %19 = vector.broadcast %18 : f32 to vector<4x4xf32>
    %20 = arith.mulf %19, %13 : vector<4x4xf32>
    %21 = arith.addf %11, %20 : vector<4x4xf32>
    %c0_9 = arith.constant 0 : index
    %c0_10 = arith.constant 0 : index
    %c0_11 = arith.constant 0 : index
    %c2 = arith.constant 2 : index
    %22 = vector.load %arg0[%c0_9, %c0_10, %c0_11, %c2] : memref<1x2x6x6xf32, #tpu.memory_space<vmem>>, vector<1x1x4x4xf32>
    %23 = vector.shape_cast %22 : vector<1x1x4x4xf32> to vector<4x4xf32>
    %c2_12 = arith.constant 2 : index
    %24 = memref.load %arg1[%c2_12] : memref<36xf32, #tpu.memory_space<smem>>
    %25 = vector.broadcast %24 : f32 to vector<4x4xf32>
    %26 = arith.mulf %25, %23 : vector<4x4xf32>
    %27 = arith.addf %17, %26 : vector<4x4xf32>
    %c20 = arith.constant 20 : index
    %28 = memref.load %arg1[%c20] : memref<36xf32, #tpu.memory_space<smem>>
    %29 = vector.broadcast %28 : f32 to vector<4x4xf32>
    %30 = arith.mulf %29, %23 : vector<4x4xf32>
    %31 = arith.addf %21, %30 : vector<4x4xf32>
    %c0_13 = arith.constant 0 : index
    %c0_14 = arith.constant 0 : index
    %c1_15 = arith.constant 1 : index
    %c0_16 = arith.constant 0 : index
    %32 = vector.load %arg0[%c0_13, %c0_14, %c1_15, %c0_16] : memref<1x2x6x6xf32, #tpu.memory_space<vmem>>, vector<1x1x4x4xf32>
    %33 = vector.shape_cast %32 : vector<1x1x4x4xf32> to vector<4x4xf32>
    %c3 = arith.constant 3 : index
    %34 = memref.load %arg1[%c3] : memref<36xf32, #tpu.memory_space<smem>>
    %35 = vector.broadcast %34 : f32 to vector<4x4xf32>
    %36 = arith.mulf %35, %33 : vector<4x4xf32>
    %37 = arith.addf %27, %36 : vector<4x4xf32>
    %c21 = arith.constant 21 : index
    %38 = memref.load %arg1[%c21] : memref<36xf32, #tpu.memory_space<smem>>
    %39 = vector.broadcast %38 : f32 to vector<4x4xf32>
    %40 = arith.mulf %39, %33 : vector<4x4xf32>
    %41 = arith.addf %31, %40 : vector<4x4xf32>
    %c0_17 = arith.constant 0 : index
    %c0_18 = arith.constant 0 : index
    %c1_19 = arith.constant 1 : index
    %c1_20 = arith.constant 1 : index
    %42 = vector.load %arg0[%c0_17, %c0_18, %c1_19, %c1_20] : memref<1x2x6x6xf32, #tpu.memory_space<vmem>>, vector<1x1x4x4xf32>
    %43 = vector.shape_cast %42 : vector<1x1x4x4xf32> to vector<4x4xf32>
    %c4 = arith.constant 4 : index
    %44 = memref.load %arg1[%c4] : memref<36xf32, #tpu.memory_space<smem>>
    %45 = vector.broadcast %44 : f32 to vector<4x4xf32>
    %46 = arith.mulf %45, %43 : vector<4x4xf32>
    %47 = arith.addf %37, %46 : vector<4x4xf32>
    %c22 = arith.constant 22 : index
    %48 = memref.load %arg1[%c22] : memref<36xf32, #tpu.memory_space<smem>>
    %49 = vector.broadcast %48 : f32 to vector<4x4xf32>
    %50 = arith.mulf %49, %43 : vector<4x4xf32>
    %51 = arith.addf %41, %50 : vector<4x4xf32>
    %c0_21 = arith.constant 0 : index
    %c0_22 = arith.constant 0 : index
    %c1_23 = arith.constant 1 : index
    %c2_24 = arith.constant 2 : index
    %52 = vector.load %arg0[%c0_21, %c0_22, %c1_23, %c2_24] : memref<1x2x6x6xf32, #tpu.memory_space<vmem>>, vector<1x1x4x4xf32>
    %53 = vector.shape_cast %52 : vector<1x1x4x4xf32> to vector<4x4xf32>
    %c5 = arith.constant 5 : index
    %54 = memref.load %arg1[%c5] : memref<36xf32, #tpu.memory_space<smem>>
    %55 = vector.broadcast %54 : f32 to vector<4x4xf32>
    %56 = arith.mulf %55, %53 : vector<4x4xf32>
    %57 = arith.addf %47, %56 : vector<4x4xf32>
    %c23 = arith.constant 23 : index
    %58 = memref.load %arg1[%c23] : memref<36xf32, #tpu.memory_space<smem>>
    %59 = vector.broadcast %58 : f32 to vector<4x4xf32>
    %60 = arith.mulf %59, %53 : vector<4x4xf32>
    %61 = arith.addf %51, %60 : vector<4x4xf32>
    %c0_25 = arith.constant 0 : index
    %c0_26 = arith.constant 0 : index
    %c2_27 = arith.constant 2 : index
    %c0_28 = arith.constant 0 : index
    %62 = vector.load %arg0[%c0_25, %c0_26, %c2_27, %c0_28] : memref<1x2x6x6xf32, #tpu.memory_space<vmem>>, vector<1x1x4x4xf32>
    %63 = vector.shape_cast %62 : vector<1x1x4x4xf32> to vector<4x4xf32>
    %c6 = arith.constant 6 : index
    %64 = memref.load %arg1[%c6] : memref<36xf32, #tpu.memory_space<smem>>
    %65 = vector.broadcast %64 : f32 to vector<4x4xf32>
    %66 = arith.mulf %65, %63 : vector<4x4xf32>
    %67 = arith.addf %57, %66 : vector<4x4xf32>
    %c24 = arith.constant 24 : index
    %68 = memref.load %arg1[%c24] : memref<36xf32, #tpu.memory_space<smem>>
    %69 = vector.broadcast %68 : f32 to vector<4x4xf32>
    %70 = arith.mulf %69, %63 : vector<4x4xf32>
    %71 = arith.addf %61, %70 : vector<4x4xf32>
    %c0_29 = arith.constant 0 : index
    %c0_30 = arith.constant 0 : index
    %c2_31 = arith.constant 2 : index
    %c1_32 = arith.constant 1 : index
    %72 = vector.load %arg0[%c0_29, %c0_30, %c2_31, %c1_32] : memref<1x2x6x6xf32, #tpu.memory_space<vmem>>, vector<1x1x4x4xf32>
    %73 = vector.shape_cast %72 : vector<1x1x4x4xf32> to vector<4x4xf32>
    %c7 = arith.constant 7 : index
    %74 = memref.load %arg1[%c7] : memref<36xf32, #tpu.memory_space<smem>>
    %75 = vector.broadcast %74 : f32 to vector<4x4xf32>
    %76 = arith.mulf %75, %73 : vector<4x4xf32>
    %77 = arith.addf %67, %76 : vector<4x4xf32>
    %c25 = arith.constant 25 : index
    %78 = memref.load %arg1[%c25] : memref<36xf32, #tpu.memory_space<smem>>
    %79 = vector.broadcast %78 : f32 to vector<4x4xf32>
    %80 = arith.mulf %79, %73 : vector<4x4xf32>
    %81 = arith.addf %71, %80 : vector<4x4xf32>
    %c0_33 = arith.constant 0 : index
    %c0_34 = arith.constant 0 : index
    %c2_35 = arith.constant 2 : index
    %c2_36 = arith.constant 2 : index
    %82 = vector.load %arg0[%c0_33, %c0_34, %c2_35, %c2_36] : memref<1x2x6x6xf32, #tpu.memory_space<vmem>>, vector<1x1x4x4xf32>
    %83 = vector.shape_cast %82 : vector<1x1x4x4xf32> to vector<4x4xf32>
    %c8 = arith.constant 8 : index
    %84 = memref.load %arg1[%c8] : memref<36xf32, #tpu.memory_space<smem>>
    %85 = vector.broadcast %84 : f32 to vector<4x4xf32>
    %86 = arith.mulf %85, %83 : vector<4x4xf32>
    %87 = arith.addf %77, %86 : vector<4x4xf32>
    %c26 = arith.constant 26 : index
    %88 = memref.load %arg1[%c26] : memref<36xf32, #tpu.memory_space<smem>>
    %89 = vector.broadcast %88 : f32 to vector<4x4xf32>
    %90 = arith.mulf %89, %83 : vector<4x4xf32>
    %91 = arith.addf %81, %90 : vector<4x4xf32>
    %c0_37 = arith.constant 0 : index
    %c1_38 = arith.constant 1 : index
    %c0_39 = arith.constant 0 : index
    %c0_40 = arith.constant 0 : index
    %92 = vector.load %arg0[%c0_37, %c1_38, %c0_39, %c0_40] : memref<1x2x6x6xf32, #tpu.memory_space<vmem>>, vector<1x1x4x4xf32>
    %93 = vector.shape_cast %92 : vector<1x1x4x4xf32> to vector<4x4xf32>
    %c9 = arith.constant 9 : index
    %94 = memref.load %arg1[%c9] : memref<36xf32, #tpu.memory_space<smem>>
    %95 = vector.broadcast %94 : f32 to vector<4x4xf32>
    %96 = arith.mulf %95, %93 : vector<4x4xf32>
    %97 = arith.addf %87, %96 : vector<4x4xf32>
    %c27 = arith.constant 27 : index
    %98 = memref.load %arg1[%c27] : memref<36xf32, #tpu.memory_space<smem>>
    %99 = vector.broadcast %98 : f32 to vector<4x4xf32>
    %100 = arith.mulf %99, %93 : vector<4x4xf32>
    %101 = arith.addf %91, %100 : vector<4x4xf32>
    %c0_41 = arith.constant 0 : index
    %c1_42 = arith.constant 1 : index
    %c0_43 = arith.constant 0 : index
    %c1_44 = arith.constant 1 : index
    %102 = vector.load %arg0[%c0_41, %c1_42, %c0_43, %c1_44] : memref<1x2x6x6xf32, #tpu.memory_space<vmem>>, vector<1x1x4x4xf32>
    %103 = vector.shape_cast %102 : vector<1x1x4x4xf32> to vector<4x4xf32>
    %c10 = arith.constant 10 : index
    %104 = memref.load %arg1[%c10] : memref<36xf32, #tpu.memory_space<smem>>
    %105 = vector.broadcast %104 : f32 to vector<4x4xf32>
    %106 = arith.mulf %105, %103 : vector<4x4xf32>
    %107 = arith.addf %97, %106 : vector<4x4xf32>
    %c28 = arith.constant 28 : index
    %108 = memref.load %arg1[%c28] : memref<36xf32, #tpu.memory_space<smem>>
    %109 = vector.broadcast %108 : f32 to vector<4x4xf32>
    %110 = arith.mulf %109, %103 : vector<4x4xf32>
    %111 = arith.addf %101, %110 : vector<4x4xf32>
    %c0_45 = arith.constant 0 : index
    %c1_46 = arith.constant 1 : index
    %c0_47 = arith.constant 0 : index
    %c2_48 = arith.constant 2 : index
    %112 = vector.load %arg0[%c0_45, %c1_46, %c0_47, %c2_48] : memref<1x2x6x6xf32, #tpu.memory_space<vmem>>, vector<1x1x4x4xf32>
    %113 = vector.shape_cast %112 : vector<1x1x4x4xf32> to vector<4x4xf32>
    %c11 = arith.constant 11 : index
    %114 = memref.load %arg1[%c11] : memref<36xf32, #tpu.memory_space<smem>>
    %115 = vector.broadcast %114 : f32 to vector<4x4xf32>
    %116 = arith.mulf %115, %113 : vector<4x4xf32>
    %117 = arith.addf %107, %116 : vector<4x4xf32>
    %c29 = arith.constant 29 : index
    %118 = memref.load %arg1[%c29] : memref<36xf32, #tpu.memory_space<smem>>
    %119 = vector.broadcast %118 : f32 to vector<4x4xf32>
    %120 = arith.mulf %119, %113 : vector<4x4xf32>
    %121 = arith.addf %111, %120 : vector<4x4xf32>
    %c0_49 = arith.constant 0 : index
    %c1_50 = arith.constant 1 : index
    %c1_51 = arith.constant 1 : index
    %c0_52 = arith.constant 0 : index
    %122 = vector.load %arg0[%c0_49, %c1_50, %c1_51, %c0_52] : memref<1x2x6x6xf32, #tpu.memory_space<vmem>>, vector<1x1x4x4xf32>
    %123 = vector.shape_cast %122 : vector<1x1x4x4xf32> to vector<4x4xf32>
    %c12 = arith.constant 12 : index
    %124 = memref.load %arg1[%c12] : memref<36xf32, #tpu.memory_space<smem>>
    %125 = vector.broadcast %124 : f32 to vector<4x4xf32>
    %126 = arith.mulf %125, %123 : vector<4x4xf32>
    %127 = arith.addf %117, %126 : vector<4x4xf32>
    %c30 = arith.constant 30 : index
    %128 = memref.load %arg1[%c30] : memref<36xf32, #tpu.memory_space<smem>>
    %129 = vector.broadcast %128 : f32 to vector<4x4xf32>
    %130 = arith.mulf %129, %123 : vector<4x4xf32>
    %131 = arith.addf %121, %130 : vector<4x4xf32>
    %c0_53 = arith.constant 0 : index
    %c1_54 = arith.constant 1 : index
    %c1_55 = arith.constant 1 : index
    %c1_56 = arith.constant 1 : index
    %132 = vector.load %arg0[%c0_53, %c1_54, %c1_55, %c1_56] : memref<1x2x6x6xf32, #tpu.memory_space<vmem>>, vector<1x1x4x4xf32>
    %133 = vector.shape_cast %132 : vector<1x1x4x4xf32> to vector<4x4xf32>
    %c13 = arith.constant 13 : index
    %134 = memref.load %arg1[%c13] : memref<36xf32, #tpu.memory_space<smem>>
    %135 = vector.broadcast %134 : f32 to vector<4x4xf32>
    %136 = arith.mulf %135, %133 : vector<4x4xf32>
    %137 = arith.addf %127, %136 : vector<4x4xf32>
    %c31 = arith.constant 31 : index
    %138 = memref.load %arg1[%c31] : memref<36xf32, #tpu.memory_space<smem>>
    %139 = vector.broadcast %138 : f32 to vector<4x4xf32>
    %140 = arith.mulf %139, %133 : vector<4x4xf32>
    %141 = arith.addf %131, %140 : vector<4x4xf32>
    %c0_57 = arith.constant 0 : index
    %c1_58 = arith.constant 1 : index
    %c1_59 = arith.constant 1 : index
    %c2_60 = arith.constant 2 : index
    %142 = vector.load %arg0[%c0_57, %c1_58, %c1_59, %c2_60] : memref<1x2x6x6xf32, #tpu.memory_space<vmem>>, vector<1x1x4x4xf32>
    %143 = vector.shape_cast %142 : vector<1x1x4x4xf32> to vector<4x4xf32>
    %c14 = arith.constant 14 : index
    %144 = memref.load %arg1[%c14] : memref<36xf32, #tpu.memory_space<smem>>
    %145 = vector.broadcast %144 : f32 to vector<4x4xf32>
    %146 = arith.mulf %145, %143 : vector<4x4xf32>
    %147 = arith.addf %137, %146 : vector<4x4xf32>
    %c32 = arith.constant 32 : index
    %148 = memref.load %arg1[%c32] : memref<36xf32, #tpu.memory_space<smem>>
    %149 = vector.broadcast %148 : f32 to vector<4x4xf32>
    %150 = arith.mulf %149, %143 : vector<4x4xf32>
    %151 = arith.addf %141, %150 : vector<4x4xf32>
    %c0_61 = arith.constant 0 : index
    %c1_62 = arith.constant 1 : index
    %c2_63 = arith.constant 2 : index
    %c0_64 = arith.constant 0 : index
    %152 = vector.load %arg0[%c0_61, %c1_62, %c2_63, %c0_64] : memref<1x2x6x6xf32, #tpu.memory_space<vmem>>, vector<1x1x4x4xf32>
    %153 = vector.shape_cast %152 : vector<1x1x4x4xf32> to vector<4x4xf32>
    %c15 = arith.constant 15 : index
    %154 = memref.load %arg1[%c15] : memref<36xf32, #tpu.memory_space<smem>>
    %155 = vector.broadcast %154 : f32 to vector<4x4xf32>
    %156 = arith.mulf %155, %153 : vector<4x4xf32>
    %157 = arith.addf %147, %156 : vector<4x4xf32>
    %c33 = arith.constant 33 : index
    %158 = memref.load %arg1[%c33] : memref<36xf32, #tpu.memory_space<smem>>
    %159 = vector.broadcast %158 : f32 to vector<4x4xf32>
    %160 = arith.mulf %159, %153 : vector<4x4xf32>
    %161 = arith.addf %151, %160 : vector<4x4xf32>
    %c0_65 = arith.constant 0 : index
    %c1_66 = arith.constant 1 : index
    %c2_67 = arith.constant 2 : index
    %c1_68 = arith.constant 1 : index
    %162 = vector.load %arg0[%c0_65, %c1_66, %c2_67, %c1_68] : memref<1x2x6x6xf32, #tpu.memory_space<vmem>>, vector<1x1x4x4xf32>
    %163 = vector.shape_cast %162 : vector<1x1x4x4xf32> to vector<4x4xf32>
    %c16 = arith.constant 16 : index
    %164 = memref.load %arg1[%c16] : memref<36xf32, #tpu.memory_space<smem>>
    %165 = vector.broadcast %164 : f32 to vector<4x4xf32>
    %166 = arith.mulf %165, %163 : vector<4x4xf32>
    %167 = arith.addf %157, %166 : vector<4x4xf32>
    %c34 = arith.constant 34 : index
    %168 = memref.load %arg1[%c34] : memref<36xf32, #tpu.memory_space<smem>>
    %169 = vector.broadcast %168 : f32 to vector<4x4xf32>
    %170 = arith.mulf %169, %163 : vector<4x4xf32>
    %171 = arith.addf %161, %170 : vector<4x4xf32>
    %c0_69 = arith.constant 0 : index
    %c1_70 = arith.constant 1 : index
    %c2_71 = arith.constant 2 : index
    %c2_72 = arith.constant 2 : index
    %172 = vector.load %arg0[%c0_69, %c1_70, %c2_71, %c2_72] : memref<1x2x6x6xf32, #tpu.memory_space<vmem>>, vector<1x1x4x4xf32>
    %173 = vector.shape_cast %172 : vector<1x1x4x4xf32> to vector<4x4xf32>
    %c17 = arith.constant 17 : index
    %174 = memref.load %arg1[%c17] : memref<36xf32, #tpu.memory_space<smem>>
    %175 = vector.broadcast %174 : f32 to vector<4x4xf32>
    %176 = arith.mulf %175, %173 : vector<4x4xf32>
    %177 = arith.addf %167, %176 : vector<4x4xf32>
    %c35 = arith.constant 35 : index
    %178 = memref.load %arg1[%c35] : memref<36xf32, #tpu.memory_space<smem>>
    %179 = vector.broadcast %178 : f32 to vector<4x4xf32>
    %180 = arith.mulf %179, %173 : vector<4x4xf32>
    %181 = arith.addf %171, %180 : vector<4x4xf32>
    %c0_73 = arith.constant 0 : index
    %182 = memref.load %arg2[%c0_73] : memref<2xf32, #tpu.memory_space<smem>>
    %183 = vector.broadcast %182 : f32 to vector<4x4xf32>
    %184 = arith.addf %177, %183 : vector<4x4xf32>
    %c0_74 = arith.constant 0 : index
    %c0_75 = arith.constant 0 : index
    %c0_76 = arith.constant 0 : index
    %c0_77 = arith.constant 0 : index
    %185 = vector.load %arg3[%c0_74, %c0_75, %c0_76, %c0_77] : memref<1x2x4x4xf32, #tpu.memory_space<vmem>>, vector<1x1x4x4xf32>
    %186 = vector.shape_cast %185 : vector<1x1x4x4xf32> to vector<4x4xf32>
    %187 = vector.shape_cast %184 : vector<4x4xf32> to vector<1x1x4x4xf32>
    tpu.vector_store %arg3[%c0_74, %c0_75, %c0_76, %c0_77], %187 {strides = array<i32>} : memref<1x2x4x4xf32, #tpu.memory_space<vmem>>, vector<1x1x4x4xf32>,
    %c1_78 = arith.constant 1 : index
    %188 = memref.load %arg2[%c1_78] : memref<2xf32, #tpu.memory_space<smem>>
    %189 = vector.broadcast %188 : f32 to vector<4x4xf32>
    %190 = arith.addf %181, %189 : vector<4x4xf32>
    %c0_79 = arith.constant 0 : index
    %c1_80 = arith.constant 1 : index
    %c0_81 = arith.constant 0 : index
    %c0_82 = arith.constant 0 : index
    %191 = vector.load %arg3[%c0_79, %c1_80, %c0_81, %c0_82] : memref<1x2x4x4xf32, #tpu.memory_space<vmem>>, vector<1x1x4x4xf32>
    %192 = vector.shape_cast %191 : vector<1x1x4x4xf32> to vector<4x4xf32>
    %193 = vector.shape_cast %190 : vector<4x4xf32> to vector<1x1x4x4xf32>
    tpu.vector_store %arg3[%c0_79, %c1_80, %c0_81, %c0_82], %193 {strides = array<i32>} : memref<1x2x4x4xf32, #tpu.memory_space<vmem>>, vector<1x1x4x4xf32>,
    return
  }
}

</mosaic_0001>

<bundles_post_ra>
// kernel: tpu_custom_call.1
= control target key start
LH: loop header
LB: loop body
LE: loop exit
PB: predicated region body
PF: predicated region fallthrough
CT: control target
= control target key end

     0   :  { %8 = vsyncpa [#allocation4], 0  ;;  %s537_s0 = inlined_call_operand.vmem [shape: f32[1,2,6,6], index: 0, kind: input, shape index: {}]   ;;  %s538_s1 = inlined_call_operand.vmem [shape: f32[36], index: 1, kind: input, shape index: {}]   ;;  %s539_s2 = inlined_call_operand.vmem [shape: f32[2], index: 2, kind: input, shape index: {}]   ;;  %s540_s3 = inlined_call_operand.hbm [shape: f32[1,2,4,4], index: 3, kind: output, shape index: {}]  }
   0x1   :  { %9 = vsyncpa [#allocation6], 0 }
   0x2   :  { %10 = vsyncpa [#allocation3], 0  ;;  %s19_s14 = sshll.u32 %s538_s1, 4  ;;  %s29_s17 = sshll.u32 %s539_s2, 4  ;;  %s20_s14 = int_to_ptr.vmem [resolvable:$true] %s19_s14  ;;  %s30_s17 = int_to_ptr.vmem [resolvable:$true] %s29_s17 }
   0x3   :  { %s361_s18 = scalar_lea.vmem %s20_s14, 16  ;;  %p366_p1 = scmp.lt.s32.totalorder %s20_s14, %s20_s14 }
   0x4   :  { %p362_p0 = scmp.ne.s32.totalorder %s20_s14, %s361_s18  ;;  %p367_p2 = scmp.lt.s32.totalorder %s361_s18, %s361_s18 }
   0x6   :  { %p368_p3 = por %p367_p2, %p366_p1 }
   0x8   :  { %p369_p4 = pnand %p368_p3, %p362_p0 }
   0xa   :  { %372 = shalt.err (!%p369_p4)
}
   0xb   :  { %s411_s19 = smov [#allocation2]   ;;  %s373_s20 = scalar_lea.vmem %s30_s17, 16 }
   0xc   :  { %22 = dma.vmem_to_smem %s20_s14, 16, %s411_s19, [#allocation4]  }
   0xd   :  { %p374_p5 = scmp.ne.s32.totalorder %s30_s17, %s373_s20  ;;  %p378_p6 = scmp.lt.s32.totalorder %s30_s17, %s30_s17 }
   0xe   :  { %p379_p7 = scmp.lt.s32.totalorder %s373_s20, %s373_s20 }
  0x10   :  { %p380_p8 = por %p379_p7, %p378_p6 }
  0x12   :  { %p381_p9 = pnand %p380_p8, %p374_p5 }
  0x14   :  { %384 = shalt.err (!%p381_p9)
}
  0x15   :  { %s412_s1 = smov [#allocation5]  }
  0x16   :  { %32 = dma.vmem_to_smem %s30_s17, 16, %s412_s1, [#allocation6]  }
  0x17   :  { %405 = dma.done.wait [#allocation4], 16  }
  0x18   :  { %406 = vsyncadd [#allocation4], 4294967280 }
  0x19   :  { %407 = dma.done.wait [#allocation6], 16  }
  0x1a   :  { %408 = vsyncadd [#allocation6], 4294967280 }
  0x1b   :  { %39 = sfence }
  0x1c   :  { %s318_s2 = sld [smem:[#allocation2 + $0x2]]  ;;  %v447_v0 = vld [vmem:[%s537_s0] sm:$0xf]  ;;  %s413_s30 = smov 126   ;;  %v484_v27 = vld [vmem:[%s537_s0 + $0x8] sm:$0xf] }
  0x1d   :  { %s316_s21 = sld [smem:[#allocation2 + $0x1]]  ;;  %s414_s4 = smov 127   ;;  %v458_v9 = vld [vmem:[%s537_s0 + $0x1] sm:$0xf]  ;;  %v497_v36 = vld [vmem:[%s537_s0 + $0x9] sm:$0xf] }
  0x1e   :  { %s319_s22 = sld [smem:[#allocation2 + $0x14]]  ;;  %v471_v18 = vld [vmem:[%s537_s0 + $0x2] sm:$0xf]  ;;  %v510_v45 = vld [vmem:[%s537_s0 + $0xa] sm:$0xf]  ;;  %vm290_vm0 = vcmask 27648  }
  0x1f   :  { %s317_s23 = sld [smem:[#allocation2 + $0x13]] }
  0x20   :  { %s323_s26 = sld [smem:[#allocation2 + $0x16]] }
  0x21   :  { %s322_s27 = sld [smem:[#allocation2 + $0x4]] }
  0x22   :  { %v66_v1 = vstv %s318_s2  ;;  %s325_s28 = sld [smem:[#allocation2 + $0x17]] }
  0x23   :  { %v67_v2 = vmul.f32 %v66_v1, %v447_v0  ;;  %v50_v3 = vstv %s316_s21  ;;  %s324_s29 = sld [smem:[#allocation2 + $0x5]] }
  0x24   :  { %v51_v4 = vmul.f32 %v50_v3, %v447_v0  ;;  %v74_v5 = vstv %s319_s22  ;;  %s329_s7 = sld [smem:[#allocation2 + $0x19]] }
  0x25   :  { %69 = vrot.lane.b32.xlu1 %v67_v2, %s413_s30  ;;  %v75_v6 = vmul.f32 %v74_v5, %v447_v0  ;;  %v58_v7 = vstv %s317_s23  ;;  %s328_s8 = sld [smem:[#allocation2 + $0x7]] }
  0x26   :  { %53 = vrot.lane.b32.xlu0 %v51_v4, %s414_s4  ;;  %v59_v8 = vmul.f32 %v58_v7, %v447_v0  ;;  %v99_v10 = vstv %s323_s26  ;;  %s331_s9 = sld [smem:[#allocation2 + $0x1a]] }
  0x27   :  { %v91_v11 = vstv %s322_s27  ;;  %v100_v12 = vmul.f32 %v99_v10, %v458_v9  ;;  %s330_s10 = sld [smem:[#allocation2 + $0x8]] }
  0x28   :  { %v92_v13 = vmul.f32 %v91_v11, %v458_v9  ;;  %v115_v14 = vstv %s325_s28  ;;  %s336_s13 = sld [smem:[#allocation2 + $0x1c]] }
  0x29   :  { %77 = vrot.lane.b32.xlu1 %v75_v6, %s413_s30  ;;  %v107_v15 = vstv %s324_s29  ;;  %v116_v16 = vmul.f32 %v115_v14, %v458_v9  ;;  %s335_s14 = sld [smem:[#allocation2 + $0xa]] }
  0x2a   :  { %61 = vrot.lane.b32.xlu0 %v59_v8, %s414_s4  ;;  %v108_v17 = vmul.f32 %v107_v15, %v458_v9  ;;  %v140_v19 = vstv %s329_s7  ;;  %s338_s15 = sld [smem:[#allocation2 + $0x1d]] }
  0x2b   :  { %v132_v20 = vstv %s328_s8  ;;  %v141_v21 = vmul.f32 %v140_v19, %v471_v18  ;;  %s337_s16 = sld [smem:[#allocation2 + $0xb]] }
  0x2c   :  { %v133_v22 = vmul.f32 %v132_v20, %v471_v18  ;;  %v156_v23 = vstv %s331_s9  ;;  %s343_s19 = sld [smem:[#allocation2 + $0x1f]] }
  0x2d   :  { %102 = vrot.lane.b32.xlu1 %v100_v12, %s414_s4  ;;  %v148_v24 = vstv %s330_s10  ;;  %v157_v25 = vmul.f32 %v156_v23, %v471_v18  ;;  %s342_s20 = sld [smem:[#allocation2 + $0xd]] }
  0x2e   :  { %94 = vrot.lane.b32.xlu0 %v92_v13, %s414_s4  ;;  %v149_v26 = vmul.f32 %v148_v24, %v471_v18  ;;  %v182_v28 = vstv %s336_s13  ;;  %s345_s1 = sld [smem:[#allocation2 + $0x20]] }
  0x2f   :  { %v174_v29 = vstv %s335_s14  ;;  %v183_v30 = vmul.f32 %v484_v27, %v182_v28  ;;  %s344_s2 = sld [smem:[#allocation2 + $0xe]] }
  0x30   :  { %v175_v31 = vmul.f32 %v484_v27, %v174_v29  ;;  %v198_v32 = vstv %s338_s15  ;;  %s350_s23 = sld [smem:[#allocation2 + $0x22]]  ;;  %s415_s15 = smov [#allocation7]  }
  0x31   :  { %118 = vrot.lane.b32.xlu1 %v116_v16, %s413_s30  ;;  %v190_v33 = vstv %s337_s16  ;;  %v199_v34 = vmul.f32 %v484_v27, %v198_v32  ;;  %s349_s24 = sld [smem:[#allocation2 + $0x10]]  ;;  %s302_s16 = sshll.u32 %s415_s15, 4  ;;  %s303_s16 = int_to_ptr.vmem [resolvable:$true] %s302_s16 }
  0x32   :  { %110 = vrot.lane.b32.xlu0 %v108_v17, %s413_s30  ;;  %v191_v35 = vmul.f32 %v484_v27, %v190_v33  ;;  %v223_v37 = vstv %s343_s19  ;;  %s352_s25 = sld [smem:[#allocation2 + $0x23]]  ;;  %s385_s17 = scalar_lea.vmem %s303_s16, 128 }
  0x33   :  { %v215_v38 = vstv %s342_s20  ;;  %v224_v39 = vmul.f32 %v497_v36, %v223_v37  ;;  %s351_s26 = sld [smem:[#allocation2 + $0x11]]  ;;  %p386_p10 = scmp.ne.s32.totalorder %s303_s16, %s385_s17 }
  0x34   :  { %v216_v40 = vmul.f32 %v497_v36, %v215_v38  ;;  %v239_v41 = vstv %s345_s1  ;;  %s41_s0 = sld [smem:[#allocation2]]  ;;  %p390_p11 = scmp.lt.s32.totalorder %s303_s16, %s303_s16 }
  0x35   :  { %143 = vrot.lane.b32.xlu1 %v141_v21, %s414_s4  ;;  %v231_v42 = vstv %s344_s2  ;;  %v240_v43 = vmul.f32 %v497_v36, %v239_v41  ;;  %s315_s29 = sld [smem:[#allocation2 + $0x12]]  ;;  %p391_p12 = scmp.lt.s32.totalorder %s385_s17, %s385_s17 }
  0x36   :  { %135 = vrot.lane.b32.xlu0 %v133_v22, %s414_s4  ;;  %v232_v44 = vmul.f32 %v497_v36, %v231_v42  ;;  %v264_v46 = vstv %s350_s23  ;;  %s320_s5 = sld [smem:[#allocation2 + $0x3]] }
  0x37   :  { %v256_v47 = vstv %s349_s24  ;;  %v265_v48 = vmul.f32 %v510_v45, %v264_v46  ;;  %s321_s6 = sld [smem:[#allocation2 + $0x15]]  ;;  %p392_p13 = por %p391_p12, %p390_p11 }
  0x38   :  { %v257_v49 = vmul.f32 %v510_v45, %v256_v47  ;;  %v280_v50 = vstv %s352_s25  ;;  %s327_s7 = sld [smem:[#allocation2 + $0x18]] }
  0x39   :  { %159 = vrot.lane.b32.xlu1 %v157_v25, %s413_s30  ;;  %v272_v51 = vstv %s351_s26  ;;  %v281_v52 = vmul.f32 %v510_v45, %v280_v50  ;;  %s326_s8 = sld [smem:[#allocation2 + $0x6]]  ;;  %p393_p0 = pnand %p392_p13, %p386_p10 }
  0x3a   :  { %151 = vrot.lane.b32.xlu0 %v149_v26, %s413_s30  ;;  %v273_v53 = vmul.f32 %v510_v45, %v272_v51  ;;  %v42_v54 = vstv %s41_s0  ;;  %s341_s9 = sld [smem:[#allocation2 + $0x1e]] }
  0x3b   :  { %v43_v55 = vmul.f32 %v42_v54, %v447_v0  ;;  %v46_v56 = vstv %s315_s29  ;;  %s340_s10 = sld [smem:[#allocation2 + $0xc]] }
  0x3c   :  { %v83_v57 = vstv %s320_s5  ;;  %v47_v61 = vmul.f32 %v46_v56, %v447_v0  ;;  %s348_s11 = sld [smem:[#allocation2 + $0x21]] }
  0x3d   :  { %185 = vrot.lane.b32.xlu1 %v183_v30, %s414_s4  ;;  %v84_v62 = vmul.f32 %v83_v57, %v458_v9  ;;  %v87_v63 = vstv %s321_s6  ;;  %s347_s12 = sld [smem:[#allocation2 + $0xf]] }
  0x3e   :  { %177 = vrot.lane.b32.xlu0 %v175_v31, %s414_s4  ;;  %v88_v5 = vmul.f32 %v87_v63, %v458_v9  ;;  %v128_v11 = vstv %s327_s7  ;;  %s353_s13 = sld [smem:[#allocation5 + $0x1]] }
  0x3f   :  { %v124_v12 = vstv %s326_s8  ;;  %v129_v16 = vmul.f32 %v128_v11, %v471_v18  ;;  %s287_s14 = sld [smem:[#allocation5]] }
  0x40   :  { %v125_v17 = vmul.f32 %v124_v12, %v471_v18 }
  0x41   :  { %201 = vrot.lane.b32.xlu1 %v199_v34, %s413_s30  ;;  %v207_v41 = vstv %s340_s10 }
  0x42   :  { %193 = vrot.lane.b32.xlu0 %v191_v35, %s413_s30  ;;  %v208_v47 = vmul.f32 %v497_v36, %v207_v41 }
  0x45   :  { %226 = vrot.lane.b32.xlu1 %v224_v39, %s414_s4  ;;  %v211_v39 = vstv %s341_s9 }
  0x46   :  { %218 = vrot.lane.b32.xlu0 %v216_v40, %s414_s4 }
  0x49   :  { %242 = vrot.lane.b32.xlu1 %v240_v43, %s413_s30  ;;  %v212_v43 = vmul.f32 %v497_v36, %v211_v39 }
  0x4a   :  { %234 = vrot.lane.b32.xlu0 %v232_v44, %s413_s30 }
  0x4d   :  { %267 = vrot.lane.b32.xlu1 %v265_v48, %s414_s4 }
  0x4e   :  { %259 = vrot.lane.b32.xlu0 %v257_v49, %s414_s4  ;;  %s333_s4 = sld [smem:[#allocation2 + $0x9]] }
  0x51   :  { %283 = vrot.lane.b32.xlu1 %v281_v52, %s413_s30 }
  0x52   :  { %275 = vrot.lane.b32.xlu0 %v273_v53, %s413_s30  ;;  %s334_s30 = sld [smem:[#allocation2 + $0x1b]]  ;;  %v252_v53 = vstv %s348_s11 }
  0x53   :  { %v253_v57 = vmul.f32 %v510_v45, %v252_v53 }
  0x54   :  { %v166_v26 = vstv %s333_s4 }
  0x55   :  { %v167_v32 = vmul.f32 %v484_v27, %v166_v26 }
  0x58   :  { %v170_v24 = vstv %s334_s30 }
  0x59   :  { %v171_v29 = vmul.f32 %v484_v27, %v170_v24 }
  0x97   :  { %v70_v58 = vpop.permute.xlu1 %69 }
  0x98   :  { %v54_v59 = vpop.permute.xlu0 %53 }
  0x99   :  { %v56_v60 = vadd.f32 %v54_v59, %v43_v55  ;;  %v248_v55 = vstv %s347_s12 }
  0x9b   :  { %v72_v1 = vadd.f32 %v70_v58, %v56_v60  ;;  %v78_v2 = vpop.permute.xlu1 %77  ;;  %v249_v60 = vmul.f32 %v510_v45, %v248_v55 }
  0x9c   :  { %v62_v3 = vpop.permute.xlu0 %61 }
  0x9d   :  { %v64_v4 = vadd.f32 %v62_v3, %v47_v61  ;;  %v85_v6 = vadd.f32 %v84_v62, %v72_v1 }
  0x9f   :  { %v80_v7 = vadd.f32 %v78_v2, %v64_v4  ;;  %v103_v8 = vpop.permute.xlu1 %102 }
  0xa0   :  { %v95_v10 = vpop.permute.xlu0 %94 }
  0xa1   :  { %v89_v13 = vadd.f32 %v88_v5, %v80_v7  ;;  %v97_v0 = vadd.f32 %v95_v10, %v85_v6  ;;  %v293_v6 = vstv %s353_s13  ;;  %v288_v10 = vstv %s287_s14 }
  0xa3   :  { %v105_v14 = vadd.f32 %v103_v8, %v89_v13  ;;  %v119_v15 = vpop.permute.xlu1 %118 }
  0xa4   :  { %v111_v19 = vpop.permute.xlu0 %110 }
  0xa5   :  { %v121_v20 = vadd.f32 %v119_v15, %v105_v14  ;;  %v113_v21 = vadd.f32 %v111_v19, %v97_v0 }
  0xa7   :  { %v144_v9 = vpop.permute.xlu1 %143  ;;  %v130_v22 = vadd.f32 %v129_v16, %v121_v20  ;;  %v126_v23 = vadd.f32 %v125_v17, %v113_v21 }
  0xa8   :  { %v136_v25 = vpop.permute.xlu0 %135 }
  0xa9   :  { %v146_v28 = vadd.f32 %v144_v9, %v130_v22  ;;  %v138_v30 = vadd.f32 %v136_v25, %v126_v23 }
  0xab   :  { %v160_v31 = vpop.permute.xlu1 %159 }
  0xac   :  { %v162_v33 = vadd.f32 %v160_v31, %v146_v28  ;;  %v152_v18 = vpop.permute.xlu0 %151 }
  0xad   :  { %v154_v34 = vadd.f32 %v152_v18, %v138_v30 }
  0xae   :  { %v172_v35 = vadd.f32 %v171_v29, %v162_v33 }
  0xaf   :  { %v186_v37 = vpop.permute.xlu1 %185  ;;  %v168_v38 = vadd.f32 %v167_v32, %v154_v34 }
  0xb0   :  { %v178_v40 = vpop.permute.xlu0 %177  ;;  %v188_v42 = vadd.f32 %v186_v37, %v172_v35 }
  0xb1   :  { %v180_v44 = vadd.f32 %v178_v40, %v168_v38 }
  0xb3   :  { %v202_v46 = vpop.permute.xlu1 %201 }
  0xb4   :  { %v204_v48 = vadd.f32 %v202_v46, %v188_v42  ;;  %v194_v27 = vpop.permute.xlu0 %193 }
  0xb5   :  { %v196_v49 = vadd.f32 %v194_v27, %v180_v44 }
  0xb6   :  { %v213_v50 = vadd.f32 %v212_v43, %v204_v48 }
  0xb7   :  { %v227_v51 = vpop.permute.xlu1 %226  ;;  %v209_v52 = vadd.f32 %v208_v47, %v196_v49 }
  0xb8   :  { %v219_v54 = vpop.permute.xlu0 %218  ;;  %v229_v56 = vadd.f32 %v227_v51, %v213_v50 }
  0xb9   :  { %v221_v58 = vadd.f32 %v219_v54, %v209_v52 }
  0xbb   :  { %v243_v59 = vpop.permute.xlu1 %242 }
  0xbc   :  { %v245_v61 = vadd.f32 %v243_v59, %v229_v56  ;;  %v235_v62 = vpop.permute.xlu0 %234 }
  0xbd   :  { %v237_v36 = vadd.f32 %v235_v62, %v221_v58 }
  0xbe   :  { %v254_v63 = vadd.f32 %v253_v57, %v245_v61 }
  0xbf   :  { %v268_v1 = vpop.permute.xlu1 %267  ;;  %v250_v2 = vadd.f32 %v249_v60, %v237_v36 }
  0xc0   :  { %v260_v3 = vpop.permute.xlu0 %259  ;;  %v270_v4 = vadd.f32 %v268_v1, %v254_v63 }
  0xc1   :  { %v262_v5 = vadd.f32 %v260_v3, %v250_v2 }
  0xc3   :  { %v284_v7 = vpop.permute.xlu1 %283 }
  0xc4   :  { %v286_v8 = vadd.f32 %v284_v7, %v270_v4  ;;  %v276_v11 = vpop.permute.xlu0 %275 }
  0xc5   :  { %v278_v45 = vadd.f32 %v276_v11, %v262_v5 }
  0xc6   :  { %v294_v12 = vadd.f32 %v293_v6, %v286_v8 }
  0xc7   :  { %v289_v13 = vadd.f32 %v288_v10, %v278_v45 }
  0xc8   :  { %296 = vst.msk [vmem:[#allocation7 + $0x4] sm:$0xf] %vm290_vm0, %v294_v12 }
  0xc9   :  { %291 = vst.msk [vmem:[#allocation7] sm:$0xf] %vm290_vm0, %v289_v13 }
  0xca   :  { %396 = shalt.err (!%p393_p0)
}
  0xcb   :  { %s416_s18 = smov 64   ;;  %s417_s19 = smov 4  }
  0xcc   :  { %308 = dma.vmem_to_hbm [thread:$0]  %s303_s16, 128, %s540_s3, [#allocation3], %s416_s18, %s416_s18, %s417_s19  }
  0xcd   :  { %409 = dma.done.wait [#allocation3], 128  }
  0xce   :  { %410 = vsyncadd [#allocation3], 4294967168 }
  0xcf   :  { %312 = vsyncpa [#allocation3], 1 }
  0xd0   :  { %313 = vsyncpa [#allocation4], 1 }
  0xd1   :  { %314 = vsyncpa [#allocation6], 1 }

</bundles_post_ra>
